<compile_context>
chip_gen: v5e
topology: v5e:2x2
jax: 0.10.0
libtpu: 0.0.40
codegen_flags: <defaults>
</compile_context>

<pallas_src>
import jax
import jax.numpy as jnp
from jax.experimental import pallas as pl
from jax.experimental.pallas import tpu as pltpu


def _silu_kernel(x_ref, o_ref):
    x = x_ref[...]
    xf = x.astype(jnp.float32)           # mem-bound: upcast is free, keeps v5e happy
    o_ref[...] = (xf * jax.nn.sigmoid(xf)).astype(o_ref.dtype)


def _sublane_multiple(dtype):
    # packed min tile: (8,128) f32, (16,128) bf16, (32,128) int8/fp8
    itemsize = jnp.dtype(dtype).itemsize
    return max(8, 32 // max(itemsize, 1))


# ~2 MiB per block; with default double-buffered input + output this is
# ~8 MiB resident — safe on v5e (16 MiB scoped), v6e (32 MiB), v7x (32 MiB).
_TARGET_BLOCK_BYTES = 2 * 1024 * 1024


def _silu_2d(x2d):
    """Run the SiLU kernel over a 2D (rows, cols) view, tiling rows only."""
    rows, cols = x2d.shape
    dtype = x2d.dtype
    sub = _sublane_multiple(dtype)
    itemsize = jnp.dtype(dtype).itemsize

    # Rows per block so that block bytes ~= _TARGET_BLOCK_BYTES, rounded down
    # to the dtype's sublane multiple (always a power of two >= sub here).
    target_rows = max(sub, (_TARGET_BLOCK_BYTES // (cols * itemsize)) // sub * sub)
    tile_rows = min(rows, target_rows)   # == rows (full dim) or a multiple of sub

    grid = (pl.cdiv(rows, tile_rows),)
    return pl.pallas_call(
        _silu_kernel,
        out_shape=jax.ShapeDtypeStruct((rows, cols), dtype),
        grid_spec=pltpu.PrefetchScalarGridSpec(
            num_scalar_prefetch=0,
            grid=grid,
            in_specs=[pl.BlockSpec((tile_rows, cols), lambda i: (i, 0))],
            out_specs=pl.BlockSpec((tile_rows, cols), lambda i: (i, 0)),
        ),
        compiler_params=pltpu.CompilerParams(
            dimension_semantics=("parallel",)   # lets v7x shard the grid over 2 TCs
        ),
    )(x2d)


def silu(x):
    """Elementwise SiLU via Pallas. Accepts any shape / floating dtype."""
    orig_shape = x.shape
    n = x.size
    if n == 0:
        return x

    # Aligned fast path: widest lane-dense column width that divides n exactly.
    # Contiguous reshapes are metadata-only (no extra HBM traffic).
    cols = None
    for c in (4096, 2048, 1024, 512, 256, 128):
        if n % c == 0:
            cols = c
            break

    if cols is not None:
        out = _silu_2d(x.reshape(n // cols, cols))
        return out.reshape(orig_shape)

    # Ragged fallback: zero-pad (SiLU(0)=0 so padding is harmless), slice tail.
    cols = 1024
    flat = x.reshape(-1)
    n_pad = pl.cdiv(n, cols) * cols
    flat = jnp.pad(flat, (0, n_pad - n))
    out = _silu_2d(flat.reshape(n_pad // cols, cols))
    return out.reshape(-1)[:n].reshape(orig_shape)


if __name__ == "__main__":
    key = jax.random.PRNGKey(0)

    # Small transformer-activation-like shape: (batch, seq, hidden)
    x = jax.random.normal(key, (2, 8, 32), dtype=jnp.float32)
    y = silu(x)
    jax.block_until_ready(y)
    y_ref = x * jax.nn.sigmoid(x)
    assert jnp.allclose(y, y_ref, atol=1e-5, rtol=1e-5), "mismatch vs reference (aligned path)"

    # Ragged shape exercises the pad/slice fallback path.
    x2 = jax.random.normal(jax.random.PRNGKey(1), (3, 7, 5), dtype=jnp.float32)
    y2 = silu(x2)
    jax.block_until_ready(y2)
    y2_ref = x2 * jax.nn.sigmoid(x2)
    assert jnp.allclose(y2, y2_ref, atol=1e-5, rtol=1e-5), "mismatch vs reference (ragged path)"

    print("KERNEL_OK")
</pallas_src>

<mosaic_0001>
module attributes {stable_mosaic.version = 11 : i64} {
  func.func @_silu_kernel(%arg0: i32, %arg1: memref<1x512xf32, #tpu.memory_space<vmem>>, %arg2: memref<1x512xf32, #tpu.memory_space<vmem>>) attributes {dimension_semantics = [#tpu.dimension_semantics<parallel>], iteration_bounds = array<i64: 1>, scalar_prefetch = 0 : i64, scratch_operands = 0 : i64, tpu.core_type = #tpu.core_type<tc>, window_params = [{transform_indices = @transform_0, window_bounds = array<i64: 1, 512>}, {transform_indices = @transform_1, window_bounds = array<i64: 1, 512>}]} {
    %c0 = arith.constant 0 : index
    %c0_0 = arith.constant 0 : index
    %0 = vector.load %arg1[%c0, %c0_0] : memref<1x512xf32, #tpu.memory_space<vmem>>, vector<1x512xf32>
    %1 = arith.negf %0 : vector<1x512xf32>
    %2 = math.exp %1 : vector<1x512xf32>
    %cst = arith.constant 1.000000e+00 : f32
    %3 = vector.broadcast %cst : f32 to vector<1x512xf32>
    %4 = arith.addf %3, %2 : vector<1x512xf32>
    %5 = arith.divf %3, %4 : vector<1x512xf32>
    %6 = arith.mulf %0, %5 : vector<1x512xf32>
    %c0_1 = arith.constant 0 : index
    %c0_2 = arith.constant 0 : index
    %7 = vector.load %arg2[%c0_1, %c0_2] : memref<1x512xf32, #tpu.memory_space<vmem>>, vector<1x512xf32>
    tpu.vector_store %arg2[%c0_1, %c0_2], %6 {strides = array<i32>} : memref<1x512xf32, #tpu.memory_space<vmem>>, vector<1x512xf32>,
    return
  }
  func.func @transform_0(%arg0: i32) -> (i32, i32) {
    %c0_i32 = arith.constant 0 : i32
    %c0_i32_0 = arith.constant 0 : i32
    return %arg0, %c0_i32 : i32, i32
  }
  func.func @transform_1(%arg0: i32) -> (i32, i32) {
    %c0_i32 = arith.constant 0 : i32
    %c0_i32_0 = arith.constant 0 : i32
    return %arg0, %c0_i32 : i32, i32
  }
}

</mosaic_0001>

<bundles_post_ra>
// kernel: tpu_custom_call.1
= control target key start
LH: loop header
LB: loop body
LE: loop exit
PB: predicated region body
PF: predicated region fallthrough
CT: control target
= control target key end

     0   :  { %6 = vsyncpa [#allocation3], 0  ;;  %s143_s0 = inlined_call_operand.hbm [shape: f32[1,512], index: 0, kind: input, shape index: {}]   ;;  %s144_s1 = inlined_call_operand.hbm [shape: f32[1,512], index: 1, kind: output, shape index: {}]  }
   0x1   :  { %7 = vsyncpa [#allocation4], 0  ;;  %s13_s8 = sshll.u32 %s143_s0, 4  ;;  %s125_s9 = smov [#allocation2]   ;;  %s14_s8 = int_to_ptr.hbm [resolvable:$true] %s13_s8 }
   0x2   :  { %s15_s10 = sshll.u32 %s125_s9, 4  ;;  %s16_s10 = int_to_ptr.vmem [resolvable:$true] %s15_s10 }
   0x3   :  { %18 = dma.hbm_to_vmem [thread:$0]  %s14_s8, 64, %s16_s10, [#allocation3]  }
   0x4   :  { %121 = dma.done.wait [#allocation3], 64  }
   0x5   :  { %122 = vsyncadd [#allocation3], 4294967232  ;;  %v23_v0 = vld [vmem:[#allocation2] sm:$0xf]  ;;  %v44_v11 = vlaneseq  ;;  %s126_s0 = smov [#allocation5]   ;;  %s56_s14 = sshll.u32 %s144_s1, 4  ;;  %s57_s14 = int_to_ptr.hbm [resolvable:$true] %s56_s14 }
   0x6   :  { %v66_v1 = vmul.f32 -1.442695, %v23_v0  ;;  %s54_s11 = sshll.u32 %s126_s0, 4  ;;  %s55_s11 = int_to_ptr.vmem [resolvable:$true] %s54_s11 }
   0x7   :  { %vm46_vm4 = vcmp.lt.s32.totalorder %v44_v11, 512 }
   0x8   :  { %69 = vpow2.f32 %v66_v1 }
   0xe   :  { %v70_v2 = vpop.eup %69 }
   0xf   :  { %v27_v3 = vadd.f32 1.0, %v70_v2 }
  0x11   :  { %71 = vrcp.f32 %v27_v3  ;;  %v39_v6 = vand.u32 2147483648, %v27_v3  ;;  %vm33_vm0 = vweird.f32 %v27_v3  ;;  %v37_v8 = vand.u32 2147483647, %v27_v3 }
  0x13   :  { %v40_v10 = vor.u32 1.1754944e-38, %v39_v6  ;;  %vm38_vm3 = vcmp.eq.f32.partialorder %v37_v8, 8.507059e+37 }
  0x17   :  { %v72_v4 = vpop.eup %71 }
  0x18   :  { %v29_v5 = vmul.f32 %v72_v4, %v27_v3  ;;  %vm34_vm1 = vweird.f32 %v72_v4 }
  0x19   :  { %vm35_vm2 = vmor %vm33_vm0, %vm34_vm1 }
  0x1a   :  { %v30_v7 = vsub.f32 1.0, %v29_v5 }
  0x1c   :  { %v31_v9 = vmul.f32 %v72_v4, %v30_v7 }
  0x1e   :  { %v32_v12 = vadd.f32 %v72_v4, %v31_v9 }
  0x20   :  { %v36_v13 = vsel %vm35_vm2, %v72_v4, %v32_v12 }
  0x21   :  { %v41_v14 = vsel %vm38_vm3, %v40_v10, %v36_v13 }
  0x22   :  { %v43_v15 = vmul.f32 %v41_v14, %v23_v0 }
  0x24   :  { %48 = vst.msk [vmem:[#allocation5] sm:$0xf] %vm46_vm4, %v43_v15 }
  0x25   :  { %59 = dma.vmem_to_hbm [thread:$0]  %s55_s11, 64, %s57_s14, [#allocation4]  }
  0x26   :  { %123 = dma.done.wait [#allocation4], 64  }
  0x27   :  { %124 = vsyncadd [#allocation4], 4294967232 }
  0x28   :  { %64 = vsyncpa [#allocation3], 1 }
  0x29   :  { %65 = vsyncpa [#allocation4], 1 }

</bundles_post_ra>
